<compile_context>
chip_gen: v7x
topology: tpu7x:2x2x1
jax: 0.10.0
libtpu: 0.0.40
codegen_flags: <defaults>
</compile_context>

<pallas_src>
import jax
import jax.numpy as jnp
from jax import lax
from jax.experimental import pallas as pl
from jax.experimental.pallas import tpu as pltpu

LANES = 128


def _tpu_knobs():
    """Per-generation (max_tile_rows, ncores, vmem_limit_bytes, n_buffers)."""
    try:
        kind = jax.devices()[0].device_kind.lower()
    except Exception:
        kind = ""
    if "v7" in kind:
        # 2 TensorCores/chip, 64 MiB VMEM (32 MiB scoped default), 3.2 TB/s.
        return 8192, 2, 30 * 1024 * 1024, 3
    if "v6" in kind:
        # 1 TC, 128 MiB VMEM (32 MiB scoped default).
        return 8192, 1, 30 * 1024 * 1024, 2
    # v5e and unknown chips: 16 MiB scoped-VMEM default -> conservative tiles.
    return 4096, 1, None, 2


def _make_dice_kernel(tile_rows: int, steps: int, n_valid: int):
    tile_elems = tile_rows * LANES
    groups = tile_rows // 8

    def dice_kernel(p_ref, t_ref, inter_out, union_out, inter_acc, union_acc):
        c = pl.program_id(0)   # core-split axis ("parallel")
        i = pl.program_id(1)   # streaming axis ("arbitrary")

        @pl.when(i == 0)
        def _():
            inter_acc[...] = jnp.zeros_like(inter_acc)
            union_acc[...] = jnp.zeros_like(union_acc)

        # Logical block / element offset. n_valid < 2**31 is asserted in the
        # wrapper so this int32 arithmetic cannot overflow.
        blk = c * steps + i
        start = blk * tile_elems
        is_full = start + tile_elems <= n_valid
        is_partial = jnp.logical_and(start < n_valid, jnp.logical_not(is_full))

        def accumulate(p, t):
            # (tile_rows,128) -> (groups,8,128) keeps the (8,128) vreg layout;
            # the leading-axis sum is cross-vreg VALU adds (no XLU).
            inter_acc[...] += jnp.sum((p * t).reshape(groups, 8, LANES), axis=0)
            union_acc[...] += jnp.sum((p + t).reshape(groups, 8, LANES), axis=0)

        # Fully-valid tile: no masking work at all (hidden under DMA).
        @pl.when(is_full)
        def _():
            accumulate(p_ref[...].astype(jnp.float32),
                       t_ref[...].astype(jnp.float32))

        # Boundary tile: mask elements >= n_valid (covers both the zero pad
        # and unspecified contents of a partially out-of-bounds block).
        @pl.when(is_partial)
        def _():
            p = p_ref[...].astype(jnp.float32)
            t = t_ref[...].astype(jnp.float32)
            row = lax.broadcasted_iota(jnp.int32, (tile_rows, LANES), 0)
            col = lax.broadcasted_iota(jnp.int32, (tile_rows, LANES), 1)
            valid = (start + row * LANES + col) < n_valid
            accumulate(jnp.where(valid, p, 0.0), jnp.where(valid, t, 0.0))

        # Blocks with start >= n_valid (clamped duplicates) contribute nothing.

        @pl.when(i == steps - 1)
        def _():
            # Single deferred sublane reduction per core -> (1,128) partials.
            inter_out[...] = jnp.sum(
                inter_acc[...], axis=0, keepdims=True).reshape(1, 1, LANES)
            union_out[...] = jnp.sum(
                union_acc[...], axis=0, keepdims=True).reshape(1, 1, LANES)

    return dice_kernel


def dice_loss(pred, target, smooth: float = 1.0):
    """1 - (2*sum(pred*target)+smooth) / (sum(pred)+sum(target)+smooth).

    Pass bf16 preds / uint8 targets directly; the kernel upcasts per-tile.
    """
    assert pred.shape == target.shape
    n = int(pred.size)
    assert 0 < n < 2 ** 31, "int32 offset arithmetic requires 0 < n < 2**31"

    max_tile_rows, ncores_pref, vmem_limit, n_buffers = _tpu_knobs()

    # bool refs are awkward in Mosaic VMEM; promote to uint8 (rare, cheap).
    if pred.dtype == jnp.bool_:
        pred = pred.astype(jnp.uint8)
    if target.dtype == jnp.bool_:
        target = target.astype(jnp.uint8)

    # Sub-32-bit dtypes pack along sublanes; keep tile_rows aligned to the
    # packed sublane tile so small-array block shapes stay legal.
    itemsize = min(pred.dtype.itemsize, target.dtype.itemsize)
    row_align = 8 * max(1, 4 // max(1, itemsize))   # 8 f32 / 16 bf16 / 32 int8

    p_flat = pred.reshape(-1)
    t_flat = target.reshape(-1)

    # Pad only to a 128-lane multiple (zero-copy for 128-divisible sizes); the
    # ragged last block is handled in-kernel, so no padding to a full tile.
    rows = -(-n // LANES)
    if rows < row_align:
        rows = row_align
    padded_n = rows * LANES
    if padded_n != n:
        p_flat = jnp.pad(p_flat, (0, padded_n - n))
        t_flat = jnp.pad(t_flat, (0, padded_n - n))

    tile_rows = min(max_tile_rows, (rows // row_align) * row_align)
    num_blocks = -(-rows // tile_rows)
    ncores = min(ncores_pref, num_blocks)
    steps = -(-num_blocks // ncores)
    last_blk = num_blocks - 1

    p2d = p_flat.reshape(rows, LANES)
    t2d = t_flat.reshape(rows, LANES)

    # Clamp so the index_map never points at a fully out-of-range block; such
    # duplicate blocks are skipped by the in-kernel gating.
    in_map = lambda c, i: (jnp.minimum(c * steps + i, last_blk), 0)
    out_map = lambda c, i: (c, 0, 0)

    compiler_kwargs = dict(dimension_semantics=("parallel", "arbitrary"))
    if vmem_limit is not None:
        compiler_kwargs["vmem_limit_bytes"] = vmem_limit

    def run(in_spec):
        return pl.pallas_call(
            _make_dice_kernel(tile_rows, steps, n),
            out_shape=(
                jax.ShapeDtypeStruct((ncores, 1, LANES), jnp.float32),
                jax.ShapeDtypeStruct((ncores, 1, LANES), jnp.float32),
            ),
            grid_spec=pltpu.PrefetchScalarGridSpec(
                num_scalar_prefetch=0,
                grid=(ncores, steps),
                in_specs=[in_spec, in_spec],
                out_specs=[
                    pl.BlockSpec((1, 1, LANES), out_map),
                    pl.BlockSpec((1, 1, LANES), out_map),
                ],
                scratch_shapes=[
                    pltpu.VMEM((8, LANES), jnp.float32),
                    pltpu.VMEM((8, LANES), jnp.float32),
                ],
            ),
            compiler_params=pltpu.CompilerParams(**compiler_kwargs),
        )(p2d, t2d)

    if n_buffers != 2:
        # Deeper input pipelining on v7x; fall back to the default depth if
        # this Pallas build rejects pipeline_mode.
        try:
            inter_p, union_p = run(
                pl.BlockSpec((tile_rows, LANES), in_map,
                             pipeline_mode=pl.Buffered(n_buffers)))
        except Exception:
            inter_p, union_p = run(pl.BlockSpec((tile_rows, LANES), in_map))
    else:
        inter_p, union_p = run(pl.BlockSpec((tile_rows, LANES), in_map))

    intersection = jnp.sum(inter_p)
    union = jnp.sum(union_p)          # == sum(pred) + sum(target)
    dice = (2.0 * intersection + smooth) / (union + smooth)
    return 1.0 - dice


def _ref_dice(pred, target, smooth=1.0):
    pred = pred.astype(jnp.float32)
    target = target.astype(jnp.float32)
    inter = jnp.sum(pred * target)
    union = jnp.sum(pred) + jnp.sum(target)
    return 1.0 - (2.0 * inter + smooth) / (union + smooth)


if __name__ == "__main__":
    key = jax.random.PRNGKey(0)

    # Primary small example (segmentation-style (B,C,H,W)).
    k1, k2 = jax.random.split(key)
    pred = jax.nn.sigmoid(jax.random.normal(k1, (2, 4, 16, 16), dtype=jnp.float32))
    target = (jax.random.uniform(k2, (2, 4, 16, 16)) > 0.5).astype(jnp.float32)
    loss = jax.block_until_ready(dice_loss(pred, target, smooth=1.0))
    ref = _ref_dice(pred, target, 1.0)
    assert jnp.allclose(loss, ref, atol=1e-5, rtol=1e-5), (loss, ref)

    # Ragged shape (n % 128 != 0): exercises pad + in-kernel mask path.
    k3, k4 = jax.random.split(k2)
    p2 = jax.nn.sigmoid(jax.random.normal(k3, (3, 5, 7, 11), dtype=jnp.float32))
    t2 = (jax.random.uniform(k4, (3, 5, 7, 11)) > 0.5).astype(jnp.float32)
    l2 = jax.block_until_ready(dice_loss(p2, t2, smooth=1.0))
    r2 = _ref_dice(p2, t2, 1.0)
    assert jnp.allclose(l2, r2, atol=1e-5, rtol=1e-5), (l2, r2)

    # 128-divisible but not 1024-divisible (540800 = 4225*128): zero-copy path,
    # multiple blocks with a partial last block.
    k5, k6 = jax.random.split(k4)
    p3 = jax.nn.sigmoid(jax.random.normal(k5, (2, 4, 260, 260), dtype=jnp.float32))
    t3 = (jax.random.uniform(k6, (2, 4, 260, 260)) > 0.5).astype(jnp.float32)
    l3 = jax.block_until_ready(dice_loss(p3, t3, smooth=1.0))
    r3 = _ref_dice(p3, t3, 1.0)
    assert jnp.allclose(l3, r3, atol=1e-5, rtol=1e-5), (l3, r3)

    # bf16 inputs passed straight through (kernel upcasts per-tile).
    k7, k8 = jax.random.split(k6)
    p4 = jax.nn.sigmoid(jax.random.normal(k7, (2, 4, 64, 64))).astype(jnp.bfloat16)
    t4 = (jax.random.uniform(k8, (2, 4, 64, 64)) > 0.5).astype(jnp.bfloat16)
    l4 = jax.block_until_ready(dice_loss(p4, t4, smooth=1.0))
    r4 = _ref_dice(p4, t4, 1.0)
    assert jnp.allclose(l4, r4, atol=1e-4, rtol=1e-4), (l4, r4)

    print("KERNEL_OK")
</pallas_src>

<mosaic_0001>
module attributes {stable_mosaic.version = 11 : i64} {
  func.func @dice_kernel(%arg0: i32, %arg1: i32, %arg2: memref<16x128xf32, #tpu.memory_space<vmem>>, %arg3: memref<16x128xf32, #tpu.memory_space<vmem>>, %arg4: memref<1x1x128xf32, #tpu.memory_space<vmem>>, %arg5: memref<1x1x128xf32, #tpu.memory_space<vmem>>, %arg6: memref<8x128xf32, #tpu.memory_space<vmem>>, %arg7: memref<8x128xf32, #tpu.memory_space<vmem>>) attributes {dimension_semantics = [#tpu.dimension_semantics<parallel>, #tpu.dimension_semantics<arbitrary>], iteration_bounds = array<i64: 1, 1>, scalar_prefetch = 0 : i64, scratch_operands = 2 : i64, tpu.core_type = #tpu.core_type<tc>, window_params = [{transform_indices = @transform_0, window_bounds = array<i64: 16, 128>}, {transform_indices = @transform_1, window_bounds = array<i64: 16, 128>}, {transform_indices = @transform_2, window_bounds = array<i64: 1, 1, 128>}, {transform_indices = @transform_3, window_bounds = array<i64: 1, 1, 128>}]} {
    %c0_i32 = arith.constant 0 : i32
    %0 = arith.cmpi eq, %arg1, %c0_i32 : i32
    %1 = arith.extui %0 : i1 to i32
    %c0_i32_0 = arith.constant 0 : i32
    %2 = arith.cmpi ne, %1, %c0_i32_0 : i32
    scf.if %2 {
      %cst = arith.constant 0.000000e+00 : f32
      %18 = vector.broadcast %cst : f32 to vector<8x128xf32>
      %c0 = arith.constant 0 : index
      %c0_8 = arith.constant 0 : index
      %19 = vector.load %arg6[%c0, %c0_8] : memref<8x128xf32, #tpu.memory_space<vmem>>, vector<8x128xf32>
      tpu.vector_store %arg6[%c0, %c0_8], %18 {strides = array<i32>} : memref<8x128xf32, #tpu.memory_space<vmem>>, vector<8x128xf32>,
      %cst_9 = arith.constant 0.000000e+00 : f32
      %20 = vector.broadcast %cst_9 : f32 to vector<8x128xf32>
      %c0_10 = arith.constant 0 : index
      %c0_11 = arith.constant 0 : index
      %21 = vector.load %arg7[%c0_10, %c0_11] : memref<8x128xf32, #tpu.memory_space<vmem>>, vector<8x128xf32>
      tpu.vector_store %arg7[%c0_10, %c0_11], %20 {strides = array<i32>} : memref<8x128xf32, #tpu.memory_space<vmem>>, vector<8x128xf32>,
    } else {
    }
    %c1_i32 = arith.constant 1 : i32
    %3 = arith.muli %arg0, %c1_i32 : i32
    %4 = arith.addi %3, %arg1 : i32
    %c2048_i32 = arith.constant 2048 : i32
    %5 = arith.muli %4, %c2048_i32 : i32
    %c2048_i32_1 = arith.constant 2048 : i32
    %6 = arith.addi %5, %c2048_i32_1 : i32
    %c2048_i32_2 = arith.constant 2048 : i32
    %7 = arith.cmpi sle, %6, %c2048_i32_2 : i32
    %c2048_i32_3 = arith.constant 2048 : i32
    %8 = arith.cmpi slt, %5, %c2048_i32_3 : i32
    %true = arith.constant true
    %9 = arith.xori %7, %true : i1
    %10 = arith.andi %8, %9 : i1
    %11 = arith.extui %7 : i1 to i32
    %c0_i32_4 = arith.constant 0 : i32
    %12 = arith.cmpi ne, %11, %c0_i32_4 : i32
    scf.if %12 {
      %c0 = arith.constant 0 : index
      %c0_8 = arith.constant 0 : index
      %18 = vector.load %arg2[%c0, %c0_8] : memref<16x128xf32, #tpu.memory_space<vmem>>, vector<16x128xf32>
      %c0_9 = arith.constant 0 : index
      %c0_10 = arith.constant 0 : index
      %19 = vector.load %arg3[%c0_9, %c0_10] : memref<16x128xf32, #tpu.memory_space<vmem>>, vector<16x128xf32>
      %c0_11 = arith.constant 0 : index
      %c0_12 = arith.constant 0 : index
      %20 = vector.load %arg6[%c0_11, %c0_12] : memref<8x128xf32, #tpu.memory_space<vmem>>, vector<8x128xf32>
      %21 = arith.mulf %18, %19 : vector<16x128xf32>
      %22 = vector.shape_cast %21 : vector<16x128xf32> to vector<2x8x128xf32>
      %cst = arith.constant dense<0.000000e+00> : vector<8x128xf32>
      %23 = vector.multi_reduction <add>, %22, %cst [0] : vector<2x8x128xf32> to vector<8x128xf32>
      %24 = arith.addf %20, %23 : vector<8x128xf32>
      %c0_13 = arith.constant 0 : index
      %c0_14 = arith.constant 0 : index
      %25 = vector.load %arg6[%c0_13, %c0_14] : memref<8x128xf32, #tpu.memory_space<vmem>>, vector<8x128xf32>
      tpu.vector_store %arg6[%c0_13, %c0_14], %24 {strides = array<i32>} : memref<8x128xf32, #tpu.memory_space<vmem>>, vector<8x128xf32>,
      %c0_15 = arith.constant 0 : index
      %c0_16 = arith.constant 0 : index
      %26 = vector.load %arg7[%c0_15, %c0_16] : memref<8x128xf32, #tpu.memory_space<vmem>>, vector<8x128xf32>
      %27 = arith.addf %18, %19 : vector<16x128xf32>
      %28 = vector.shape_cast %27 : vector<16x128xf32> to vector<2x8x128xf32>
      %cst_17 = arith.constant dense<0.000000e+00> : vector<8x128xf32>
      %29 = vector.multi_reduction <add>, %28, %cst_17 [0] : vector<2x8x128xf32> to vector<8x128xf32>
      %30 = arith.addf %26, %29 : vector<8x128xf32>
      %c0_18 = arith.constant 0 : index
      %c0_19 = arith.constant 0 : index
      %31 = vector.load %arg7[%c0_18, %c0_19] : memref<8x128xf32, #tpu.memory_space<vmem>>, vector<8x128xf32>
      tpu.vector_store %arg7[%c0_18, %c0_19], %30 {strides = array<i32>} : memref<8x128xf32, #tpu.memory_space<vmem>>, vector<8x128xf32>,
    } else {
    }
    %13 = arith.extui %10 : i1 to i32
    %c0_i32_5 = arith.constant 0 : i32
    %14 = arith.cmpi ne, %13, %c0_i32_5 : i32
    scf.if %14 {
      %c0 = arith.constant 0 : index
      %c0_8 = arith.constant 0 : index
      %18 = vector.load %arg2[%c0, %c0_8] : memref<16x128xf32, #tpu.memory_space<vmem>>, vector<16x128xf32>
      %c0_9 = arith.constant 0 : index
      %c0_10 = arith.constant 0 : index
      %19 = vector.load %arg3[%c0_9, %c0_10] : memref<16x128xf32, #tpu.memory_space<vmem>>, vector<16x128xf32>
      %20 = tpu.iota {dimensions = array<i32: 0>} : vector<16x128xi32>
      %21 = tpu.iota {dimensions = array<i32: 1>} : vector<16x128xi32>
      %c128_i32 = arith.constant 128 : i32
      %22 = vector.broadcast %c128_i32 : i32 to vector<16x128xi32>
      %23 = arith.muli %20, %22 : vector<16x128xi32>
      %24 = vector.broadcast %5 : i32 to vector<16x128xi32>
      %25 = arith.addi %24, %23 : vector<16x128xi32>
      %26 = arith.addi %25, %21 : vector<16x128xi32>
      %c2048_i32_11 = arith.constant 2048 : i32
      %27 = vector.broadcast %c2048_i32_11 : i32 to vector<16x128xi32>
      %28 = arith.cmpi slt, %26, %27 : vector<16x128xi32>
      %cst = arith.constant 0.000000e+00 : f32
      %29 = vector.broadcast %cst : f32 to vector<16x128xf32>
      %30 = arith.select %28, %18, %29 : vector<16x128xi1>, vector<16x128xf32>
      %cst_12 = arith.constant 0.000000e+00 : f32
      %31 = vector.broadcast %cst_12 : f32 to vector<16x128xf32>
      %32 = arith.select %28, %19, %31 : vector<16x128xi1>, vector<16x128xf32>
      %c0_13 = arith.constant 0 : index
      %c0_14 = arith.constant 0 : index
      %33 = vector.load %arg6[%c0_13, %c0_14] : memref<8x128xf32, #tpu.memory_space<vmem>>, vector<8x128xf32>
      %34 = arith.mulf %30, %32 : vector<16x128xf32>
      %35 = vector.shape_cast %34 : vector<16x128xf32> to vector<2x8x128xf32>
      %cst_15 = arith.constant dense<0.000000e+00> : vector<8x128xf32>
      %36 = vector.multi_reduction <add>, %35, %cst_15 [0] : vector<2x8x128xf32> to vector<8x128xf32>
      %37 = arith.addf %33, %36 : vector<8x128xf32>
      %c0_16 = arith.constant 0 : index
      %c0_17 = arith.constant 0 : index
      %38 = vector.load %arg6[%c0_16, %c0_17] : memref<8x128xf32, #tpu.memory_space<vmem>>, vector<8x128xf32>
      tpu.vector_store %arg6[%c0_16, %c0_17], %37 {strides = array<i32>} : memref<8x128xf32, #tpu.memory_space<vmem>>, vector<8x128xf32>,
      %c0_18 = arith.constant 0 : index
      %c0_19 = arith.constant 0 : index
      %39 = vector.load %arg7[%c0_18, %c0_19] : memref<8x128xf32, #tpu.memory_space<vmem>>, vector<8x128xf32>
      %40 = arith.addf %30, %32 : vector<16x128xf32>
      %41 = vector.shape_cast %40 : vector<16x128xf32> to vector<2x8x128xf32>
      %cst_20 = arith.constant dense<0.000000e+00> : vector<8x128xf32>
      %42 = vector.multi_reduction <add>, %41, %cst_20 [0] : vector<2x8x128xf32> to vector<8x128xf32>
      %43 = arith.addf %39, %42 : vector<8x128xf32>
      %c0_21 = arith.constant 0 : index
      %c0_22 = arith.constant 0 : index
      %44 = vector.load %arg7[%c0_21, %c0_22] : memref<8x128xf32, #tpu.memory_space<vmem>>, vector<8x128xf32>
      tpu.vector_store %arg7[%c0_21, %c0_22], %43 {strides = array<i32>} : memref<8x128xf32, #tpu.memory_space<vmem>>, vector<8x128xf32>,
    } else {
    }
    %c0_i32_6 = arith.constant 0 : i32
    %15 = arith.cmpi eq, %arg1, %c0_i32_6 : i32
    %16 = arith.extui %15 : i1 to i32
    %c0_i32_7 = arith.constant 0 : i32
    %17 = arith.cmpi ne, %16, %c0_i32_7 : i32
    scf.if %17 {
      %c0 = arith.constant 0 : index
      %c0_8 = arith.constant 0 : index
      %18 = vector.load %arg6[%c0, %c0_8] : memref<8x128xf32, #tpu.memory_space<vmem>>, vector<8x128xf32>
      %cst = arith.constant dense<0.000000e+00> : vector<128xf32>
      %19 = vector.multi_reduction <add>, %18, %cst [0] : vector<8x128xf32> to vector<128xf32>
      %20 = vector.shape_cast %19 : vector<128xf32> to vector<1x128xf32>
      %21 = vector.shape_cast %20 : vector<1x128xf32> to vector<1x1x128xf32>
      %c0_9 = arith.constant 0 : index
      %c0_10 = arith.constant 0 : index
      %c0_11 = arith.constant 0 : index
      %22 = vector.load %arg4[%c0_9, %c0_10, %c0_11] : memref<1x1x128xf32, #tpu.memory_space<vmem>>, vector<1x1x128xf32>
      tpu.vector_store %arg4[%c0_9, %c0_10, %c0_11], %21 {strides = array<i32>} : memref<1x1x128xf32, #tpu.memory_space<vmem>>, vector<1x1x128xf32>,
      %c0_12 = arith.constant 0 : index
      %c0_13 = arith.constant 0 : index
      %23 = vector.load %arg7[%c0_12, %c0_13] : memref<8x128xf32, #tpu.memory_space<vmem>>, vector<8x128xf32>
      %cst_14 = arith.constant dense<0.000000e+00> : vector<128xf32>
      %24 = vector.multi_reduction <add>, %23, %cst_14 [0] : vector<8x128xf32> to vector<128xf32>
      %25 = vector.shape_cast %24 : vector<128xf32> to vector<1x128xf32>
      %26 = vector.shape_cast %25 : vector<1x128xf32> to vector<1x1x128xf32>
      %c0_15 = arith.constant 0 : index
      %c0_16 = arith.constant 0 : index
      %c0_17 = arith.constant 0 : index
      %27 = vector.load %arg5[%c0_15, %c0_16, %c0_17] : memref<1x1x128xf32, #tpu.memory_space<vmem>>, vector<1x1x128xf32>
      tpu.vector_store %arg5[%c0_15, %c0_16, %c0_17], %26 {strides = array<i32>} : memref<1x1x128xf32, #tpu.memory_space<vmem>>, vector<1x1x128xf32>,
    } else {
    }
    return
  }
  func.func @transform_0(%arg0: i32, %arg1: i32) -> (i32, i32) {
    %c1_i32 = arith.constant 1 : i32
    %0 = arith.muli %arg0, %c1_i32 : i32
    %1 = arith.addi %0, %arg1 : i32
    %c0_i32 = arith.constant 0 : i32
    %2 = arith.minsi %1, %c0_i32 : i32
    %c0_i32_0 = arith.constant 0 : i32
    %c0_i32_1 = arith.constant 0 : i32
    return %2, %c0_i32_0 : i32, i32
  }
  func.func @transform_1(%arg0: i32, %arg1: i32) -> (i32, i32) {
    %c1_i32 = arith.constant 1 : i32
    %0 = arith.muli %arg0, %c1_i32 : i32
    %1 = arith.addi %0, %arg1 : i32
    %c0_i32 = arith.constant 0 : i32
    %2 = arith.minsi %1, %c0_i32 : i32
    %c0_i32_0 = arith.constant 0 : i32
    %c0_i32_1 = arith.constant 0 : i32
    return %2, %c0_i32_0 : i32, i32
  }
  func.func @transform_2(%arg0: i32, %arg1: i32) -> (i32, i32, i32) {
    %c0_i32 = arith.constant 0 : i32
    %c0_i32_0 = arith.constant 0 : i32
    %c0_i32_1 = arith.constant 0 : i32
    return %arg0, %c0_i32, %c0_i32_0 : i32, i32, i32
  }
  func.func @transform_3(%arg0: i32, %arg1: i32) -> (i32, i32, i32) {
    %c0_i32 = arith.constant 0 : i32
    %c0_i32_0 = arith.constant 0 : i32
    %c0_i32_1 = arith.constant 0 : i32
    return %arg0, %c0_i32, %c0_i32_0 : i32, i32, i32
  }
}

</mosaic_0001>

<bundles_post_ra>
// kernel: tpu_custom_call.1
= control target key start
LH: loop header
LB: loop body
LE: loop exit
PB: predicated region body
PF: predicated region fallthrough
CT: control target
= control target key end

     0   :  { %9 = vsyncpa [#allocation5], 0  ;;  %s369_s0 = inlined_call_operand.hbm [shape: f32[16,128], index: 0, kind: input, shape index: {}]   ;;  %s370_s1 = inlined_call_operand.hbm [shape: f32[16,128], index: 1, kind: input, shape index: {}]   ;;  %s371_s2 = inlined_call_operand.hbm [shape: f32[1,1,128], index: 2, kind: output, shape index: {0}]   ;;  %s372_s3 = inlined_call_operand.hbm [shape: f32[1,1,128], index: 3, kind: output, shape index: {1}]  }
   0x1   :  { %10 = vsyncpa [#allocation8], 0 }
   0x2   :  { %11 = vsyncpa [#allocation6], 0 }
   0x3   :  { %12 = vsyncpa [#allocation11], 0  ;;  %s287_s12 = smov [#allocation4]   ;;  %s191_s16 = scalar_lea.hbm %s369_s0, 256 }
   0x4   :  { %s24_s13 = sshll.u32 %s287_s12, 4  ;;  %p192_p0 = scmp.ne.s32.totalorder %s369_s0, %s191_s16  ;;  %s25_s13 = int_to_ptr.vmem [resolvable:$true] %s24_s13 }
   0x5   :  { %p195_p1 = scmp.lt.u32.totalorder %s191_s16, %s369_s0 }
   0x7   :  { %p197_p2 = pnand %p195_p1, %p192_p0 }
   0x9   :  { %200 = shalt.err (!%p197_p2)
}
   0xa   :  { %s201_s21 = scalar_lea.vmem %s25_s13, 256  ;;  %p206_p4 = scmp.lt.s32.totalorder %s25_s13, %s25_s13 }
   0xb   :  { %p202_p3 = scmp.ne.s32.totalorder %s25_s13, %s201_s21  ;;  %p207_p5 = scmp.lt.s32.totalorder %s201_s21, %s201_s21 }
   0xd   :  { %p208_p6 = por %p207_p5, %p206_p4 }
   0xf   :  { %p209_p7 = pnand %p208_p6, %p202_p3 }
  0x11   :  { %212 = shalt.err (!%p209_p7)
}
  0x12   :  { %s288_s22 = smov 128   ;;  %s289_s23 = smov 8  }
  0x13   :  { %30 = dma.hbm_to_vmem [thread:$0]  %s369_s0, 256, %s25_s13, [#allocation5], %s288_s22, %s288_s22, %s289_s23  }
  0x14   :  { %s290_s26 = smov [#allocation7]   ;;  %s213_s30 = scalar_lea.hbm %s370_s1, 256 }
  0x15   :  { %s42_s27 = sshll.u32 %s290_s26, 4  ;;  %p214_p8 = scmp.ne.s32.totalorder %s370_s1, %s213_s30  ;;  %s43_s27 = int_to_ptr.vmem [resolvable:$true] %s42_s27 }
  0x16   :  { %p217_p9 = scmp.lt.u32.totalorder %s213_s30, %s370_s1 }
  0x18   :  { %p219_p10 = pnand %p217_p9, %p214_p8 }
  0x1a   :  { %222 = shalt.err (!%p219_p10)
}
  0x1b   :  { %s223_s8 = scalar_lea.vmem %s43_s27, 256  ;;  %p228_p12 = scmp.lt.s32.totalorder %s43_s27, %s43_s27 }
  0x1c   :  { %p224_p11 = scmp.ne.s32.totalorder %s43_s27, %s223_s8  ;;  %p229_p13 = scmp.lt.s32.totalorder %s223_s8, %s223_s8 }
  0x1e   :  { %p230_p0 = por %p229_p13, %p228_p12 }
  0x20   :  { %p231_p1 = pnand %p230_p0, %p224_p11 }
  0x22   :  { %234 = shalt.err (!%p231_p1)
}
  0x23   :  { %48 = dma.hbm_to_vmem [thread:$0]  %s370_s1, 256, %s43_s27, [#allocation8], %s288_s22, %s288_s22, %s289_s23  }
  0x24   :  { %279 = dma.done.wait [#allocation5], 256  }
  0x25   :  { %280 = vsyncadd [#allocation5], 4294967040 }
  0x26   :  { %281 = dma.done.wait [#allocation8], 256  }
  0x27   :  { %282 = vsyncadd [#allocation8], 4294967040  ;;  %v80_v0 = vld [vmem:[#allocation4] sm:$0xff]  ;;  %v81_v1 = vld [vmem:[#allocation4 + $0x8] sm:$0xff]  ;;  %s291_s1 = smov [#allocation9]   ;;  %s292_s11 = smov [#allocation10]  }
  0x28   :  { %v82_v2 = vld [vmem:[#allocation7] sm:$0xff]  ;;  %v83_v3 = vld [vmem:[#allocation7 + $0x8] sm:$0xff]  ;;  %s157_s10 = sshll.u32 %s291_s1, 4  ;;  %s167_s12 = sshll.u32 %s292_s11, 4  ;;  %s158_s10 = int_to_ptr.vmem [resolvable:$true] %s157_s10  ;;  %s337_s12 = int_to_ptr.vmem [resolvable:$true] %s167_s12 }
  0x29   :  { %v85_v4 = vmul.f32 %v82_v2, %v80_v0  ;;  %v91_v5 = vadd.f32 %v82_v2, %v80_v0  ;;  %v86_v6 = vmul.f32 %v83_v3, %v81_v1  ;;  %v92_v7 = vadd.f32 %v83_v3, %v81_v1  ;;  %s235_s13 = scalar_lea.vmem %s158_s10, 16  ;;  %s239_s14 = scalar_lea.vmem %s158_s10, 32 }
  0x2a   :  { %p236_p2 = scmp.ne.s32.totalorder %s158_s10, %s235_s13  ;;  %p240_p3 = scmp.lt.s32.totalorder %s158_s10, %s158_s10 }
  0x2b   :  { %v87_v8 = vadd.f32 %v86_v6, %v85_v4  ;;  %v93_v9 = vadd.f32 %v92_v7, %v91_v5  ;;  %p241_p4 = scmp.lt.s32.totalorder %s239_s14, %s235_s13 }
  0x2d   :  { %v136_v10 = vrot.slane %v87_v8, 4  ;;  %v144_v11 = vrot.slane %v93_v9, 4  ;;  %p242_p5 = por %p241_p4, %p240_p3 }
  0x2f   :  { %v137_v12 = vadd.f32 %v136_v10, %v87_v8  ;;  %v145_v13 = vadd.f32 %v144_v11, %v93_v9  ;;  %p243_p6 = pnand %p242_p5, %p236_p2 }
  0x31   :  { %v138_v14 = vrot.slane %v137_v12, 2  ;;  %v146_v15 = vrot.slane %v145_v13, 2 }
  0x33   :  { %v139_v16 = vadd.f32 %v138_v14, %v137_v12  ;;  %v147_v17 = vadd.f32 %v146_v15, %v145_v13 }
  0x35   :  { %v140_v18 = vrot.slane %v139_v16, 1  ;;  %v148_v19 = vrot.slane %v147_v17, 1 }
  0x37   :  { %v141_v20 = vadd.f32 %v140_v18, %v139_v16  ;;  %v149_v21 = vadd.f32 %v148_v19, %v147_v17 }
  0x39   :  { %142 = vst [vmem:[#allocation9] sm:$0x1] %v141_v20  ;;  %150 = vst [vmem:[#allocation10] sm:$0x1] %v149_v21 }
  0x3a   :  { %246 = shalt.err (!%p243_p6)
}
  0x3b   :  { %s247_s17 = scalar_lea.hbm %s371_s2, 16 }
  0x3c   :  { %p248_p7 = scmp.ne.s32.totalorder %s371_s2, %s247_s17  ;;  %p251_p8 = scmp.lt.u32.totalorder %s247_s17, %s371_s2 }
  0x3e   :  { %p253_p9 = pnand %p251_p8, %p248_p7 }
  0x40   :  { %256 = shalt.err (!%p253_p9)
}
  0x41   :  { %160 = dma.vmem_to_hbm [thread:$0]  %s158_s10, 16, %s371_s2, [#allocation6]  }
  0x42   :  { %s257_s24 = scalar_lea.vmem %s337_s12, 16  ;;  %s261_s25 = scalar_lea.vmem %s337_s12, 32 }
  0x43   :  { %p258_p10 = scmp.ne.s32.totalorder %s337_s12, %s257_s24  ;;  %p262_p11 = scmp.lt.s32.totalorder %s337_s12, %s337_s12 }
  0x44   :  { %p263_p12 = scmp.lt.s32.totalorder %s261_s25, %s257_s24 }
  0x46   :  { %p264_p13 = por %p263_p12, %p262_p11 }
  0x48   :  { %p265_p0 = pnand %p264_p13, %p258_p10 }
  0x4a   :  { %268 = shalt.err (!%p265_p0)
}
  0x4b   :  { %s269_s28 = scalar_lea.hbm %s372_s3, 16 }
  0x4c   :  { %p270_p1 = scmp.ne.s32.totalorder %s372_s3, %s269_s28  ;;  %p273_p2 = scmp.lt.u32.totalorder %s269_s28, %s372_s3 }
  0x4e   :  { %p275_p3 = pnand %p273_p2, %p270_p1 }
  0x50   :  { %278 = shalt.err (!%p275_p3)
}
  0x51   :  { %170 = dma.vmem_to_hbm [thread:$0]  %s337_s12, 16, %s372_s3, [#allocation11]  }
  0x52   :  { %283 = dma.done.wait [#allocation6], 16  }
  0x53   :  { %284 = vsyncadd [#allocation6], 4294967280 }
  0x54   :  { %285 = dma.done.wait [#allocation11], 16  }
  0x55   :  { %286 = vsyncadd [#allocation11], 4294967280 }
  0x56   :  { %177 = vsyncpa [#allocation5], 1 }
  0x57   :  { %178 = vsyncpa [#allocation8], 1 }
  0x58   :  { %179 = vsyncpa [#allocation6], 1 }
  0x59   :  { %180 = vsyncpa [#allocation11], 1 }

</bundles_post_ra>
